<compile_context>
chip_gen: v7x
topology: tpu7x:2x2x1
jax: 0.10.0
libtpu: 0.0.40
codegen_flags: <defaults>
</compile_context>

<pallas_src>
import functools

import jax
import jax.numpy as jnp
from jax.experimental import pallas as pl
from jax.experimental.pallas import tpu as pltpu


def _ru(x, m):
    return (x + m - 1) // m * m


def _pick_tile(dim, cap, mult, allow_pad=True):
    """Pick a tile t for `dim` satisfying the TPU (8,128) block rule.

    Returns (t, padded_dim). t is the full dim (always legal), or a divisor of
    dim that is a multiple of `mult`, or (fallback) cap with dim padded."""
    if dim <= cap:
        return dim, dim
    cap = (cap // mult) * mult
    for t in range(cap, mult - 1, -mult):
        if dim % t == 0:
            return t, dim
    if allow_pad:
        return cap, _ru(dim, cap)
    return dim, dim


# --------------------------------------------------------------------------
# Matmul with fused per-output-channel affine (folded BN) + activation
# --------------------------------------------------------------------------

def _mm_kernel(a_ref, b_ref, s_ref, c_ref, o_ref, *, act):
    k = pl.program_id(2)

    @pl.when(k == 0)
    def _():
        o_ref[...] = jnp.zeros_like(o_ref)

    o_ref[...] += jnp.dot(a_ref[...], b_ref[...],
                          preferred_element_type=jnp.float32)

    @pl.when(k == pl.num_programs(2) - 1)
    def _():
        y = o_ref[...] * s_ref[...] + c_ref[...]
        if act == "relu":
            y = jnp.maximum(y, 0.0)
        elif act == "sigmoid":
            y = jax.nn.sigmoid(y)
        o_ref[...] = y


@functools.partial(jax.jit, static_argnames=("act",))
def matmul_affine(a, b, scale=None, bias=None, act="none"):
    """f32 out = act((a @ b) * scale + bias). bf16 MXU matmul, f32 accumulate
    directly in the resident output block (no scratch).

    a: (M, K); b: (K, N); scale/bias: (N,) or None (identity affine)."""
    M, K = a.shape
    _, N = b.shape
    if scale is None:
        scale = jnp.ones((N,), jnp.float32)
    if bias is None:
        bias = jnp.zeros((N,), jnp.float32)
    tm, Mp = _pick_tile(M, 256, 8)
    tk, Kp = _pick_tile(K, 1536, 128)
    tn, Np = _pick_tile(N, 512, 128)
    a = a.astype(jnp.bfloat16)
    b = b.astype(jnp.bfloat16)
    if (Mp, Kp) != (M, K):
        a = jnp.zeros((Mp, Kp), jnp.bfloat16).at[:M, :K].set(a)
    if (Kp, Np) != (K, N):
        b = jnp.zeros((Kp, Np), jnp.bfloat16).at[:K, :N].set(b)
    s = scale.reshape(1, N).astype(jnp.float32)
    c = bias.reshape(1, N).astype(jnp.float32)
    if Np != N:
        s = jnp.zeros((1, Np), jnp.float32).at[:, :N].set(s)
        c = jnp.zeros((1, Np), jnp.float32).at[:, :N].set(c)
    out = pl.pallas_call(
        functools.partial(_mm_kernel, act=act),
        out_shape=jax.ShapeDtypeStruct((Mp, Np), jnp.float32),
        grid=(Mp // tm, Np // tn, Kp // tk),
        in_specs=[pl.BlockSpec((tm, tk), lambda i, j, k: (i, k)),
                  pl.BlockSpec((tk, tn), lambda i, j, k: (k, j)),
                  pl.BlockSpec((1, tn), lambda i, j, k: (0, j)),
                  pl.BlockSpec((1, tn), lambda i, j, k: (0, j))],
        out_specs=pl.BlockSpec((tm, tn), lambda i, j, k: (i, j)),
        compiler_params=pltpu.CompilerParams(
            dimension_semantics=("parallel", "parallel", "arbitrary")),
    )(a, b, s, c)
    if (Mp, Np) != (M, N):
        out = out[:M, :N]
    return out


@functools.partial(jax.jit, static_argnames=("stride", "padding", "act"))
def conv_bn_act(x, w, bn, stride, padding, act):
    """Conv2d (PyTorch weight layout (Cout,Cin,kh,kw)) on NHWC input with the
    BatchNorm affine and the activation fused into the matmul epilogue."""
    cout, cin, kh, kw = w.shape
    n, h, wd, _ = x.shape
    if bn is None:
        scale = jnp.ones((cout,), jnp.float32)
        bias = jnp.zeros((cout,), jnp.float32)
    else:
        scale = bn["gamma"] / jnp.sqrt(bn["var"] + 1e-5)
        bias = bn["beta"] - bn["mean"] * scale
    wmat = jnp.transpose(w, (2, 3, 1, 0)).reshape(kh * kw * cin, cout)
    xb = x.astype(jnp.bfloat16)
    if kh == 1 and kw == 1:
        if stride > 1:
            xb = xb[:, ::stride, ::stride, :]
        oh, ow = xb.shape[1], xb.shape[2]
        a = xb.reshape(n * oh * ow, cin)
    else:
        xp = jnp.pad(xb, ((0, 0), (padding, padding), (padding, padding), (0, 0)))
        oh = (h + 2 * padding - kh) // stride + 1
        ow = (wd + 2 * padding - kw) // stride + 1
        cols = [xp[:, i:i + stride * (oh - 1) + 1:stride,
                   j:j + stride * (ow - 1) + 1:stride, :]
                for i in range(kh) for j in range(kw)]
        a = jnp.concatenate(cols, axis=-1).reshape(n * oh * ow, kh * kw * cin)
    out = matmul_affine(a, wmat, scale, bias, act)
    return out.reshape(n, oh, ow, cout)


# --------------------------------------------------------------------------
# Spatial avg/max pooling (CBAM channel attention input + global avg pool)
# --------------------------------------------------------------------------

def _pool_kernel(x_ref, avg_ref, max_ref, *, inv_l):
    li = pl.program_id(2)

    @pl.when(li == 0)
    def _():
        avg_ref[...] = jnp.zeros(avg_ref.shape, avg_ref.dtype)
        max_ref[...] = jnp.full(max_ref.shape, -1e30, max_ref.dtype)

    x = x_ref[...]
    avg_ref[...] += jnp.sum(x, axis=1, keepdims=True) * inv_l
    max_ref[...] = jnp.maximum(max_ref[...], jnp.max(x, axis=1, keepdims=True))


@jax.jit
def pool_avg_max(x):
    """x: (N, L, C) -> (avg, max) over L, each (N, 1, C); L-tiled accumulator."""
    n, l, c = x.shape
    tl, _ = _pick_tile(l, 512, 8, allow_pad=False)
    tc, _ = _pick_tile(c, 512, 128, allow_pad=False)
    return pl.pallas_call(
        functools.partial(_pool_kernel, inv_l=1.0 / l),
        out_shape=(jax.ShapeDtypeStruct((n, 1, c), jnp.float32),
                   jax.ShapeDtypeStruct((n, 1, c), jnp.float32)),
        grid=(n, c // tc, l // tl),
        in_specs=[pl.BlockSpec((1, tl, tc), lambda i, j, k: (i, k, j))],
        out_specs=(pl.BlockSpec((1, 1, tc), lambda i, j, k: (i, 0, j)),
                   pl.BlockSpec((1, 1, tc), lambda i, j, k: (i, 0, j))),
        compiler_params=pltpu.CompilerParams(
            dimension_semantics=("parallel", "parallel", "arbitrary")),
    )(x)


# --------------------------------------------------------------------------
# CBAM spatial-attention channel reduction fused with the channel gate
# --------------------------------------------------------------------------

def _sa_reduce_kernel(x_ref, ca_ref, mean_ref, max_ref):
    ca_raw = ca_ref[...]
    ca = jax.nn.sigmoid(ca_raw[:, 0:1, :] + ca_raw[:, 1:2, :])   # (1, 1, C)
    v = x_ref[...] * ca                                          # (1, tl, C)
    mean_ref[...] = jnp.mean(v, axis=2, keepdims=True)
    max_ref[...] = jnp.max(v, axis=2, keepdims=True)


@jax.jit
def sa_reduce(x, ca_raw):
    """Channel mean/max of x * sigmoid(ca) without materializing x*ca.

    x: (N, L, C); ca_raw: (N, 2, C) -> (mean, max), each (N, L, 1)."""
    n, l, c = x.shape
    tl, _ = _pick_tile(l, 512, 8, allow_pad=False)
    return pl.pallas_call(
        _sa_reduce_kernel,
        out_shape=(jax.ShapeDtypeStruct((n, l, 1), jnp.float32),
                   jax.ShapeDtypeStruct((n, l, 1), jnp.float32)),
        grid=(n, l // tl),
        in_specs=[pl.BlockSpec((1, tl, c), lambda i, j: (i, j, 0)),
                  pl.BlockSpec((1, 2, c), lambda i, j: (i, 0, 0))],
        out_specs=(pl.BlockSpec((1, tl, 1), lambda i, j: (i, j, 0)),
                   pl.BlockSpec((1, tl, 1), lambda i, j: (i, j, 0))),
        compiler_params=pltpu.CompilerParams(
            dimension_semantics=("parallel", "parallel")),
    )(x, ca_raw)


# --------------------------------------------------------------------------
# Fused CBAM application + residual + ReLU
# --------------------------------------------------------------------------

def _cbam_apply_kernel(x_ref, ca_ref, sa_ref, r_ref, o_ref):
    ca_raw = ca_ref[...]
    ca = jax.nn.sigmoid(ca_raw[:, 0:1, :] + ca_raw[:, 1:2, :])   # (1, 1, tc)
    o_ref[...] = jnp.maximum(x_ref[...] * ca * sa_ref[...] + r_ref[...], 0.0)


@jax.jit
def cbam_apply(x, ca_raw, sa, res):
    """relu(x * sigmoid(ca_raw[:,0]+ca_raw[:,1]) * sa + res), one pass.

    x/res: (N, L, C); ca_raw: (N, 2, C); sa: (N, L, 1)."""
    n, l, c = x.shape
    tl, _ = _pick_tile(l, 512, 8, allow_pad=False)
    tc, _ = _pick_tile(c, 512, 128, allow_pad=False)
    return pl.pallas_call(
        _cbam_apply_kernel,
        out_shape=jax.ShapeDtypeStruct((n, l, c), jnp.float32),
        grid=(n, l // tl, c // tc),
        in_specs=[pl.BlockSpec((1, tl, tc), lambda i, j, k: (i, j, k)),
                  pl.BlockSpec((1, 2, tc), lambda i, j, k: (i, 0, k)),
                  pl.BlockSpec((1, tl, 1), lambda i, j, k: (i, j, 0)),
                  pl.BlockSpec((1, tl, tc), lambda i, j, k: (i, j, k))],
        out_specs=pl.BlockSpec((1, tl, tc), lambda i, j, k: (i, j, k)),
        compiler_params=pltpu.CompilerParams(
            dimension_semantics=("parallel", "parallel", "parallel")),
    )(x, ca_raw, sa, res)


# --------------------------------------------------------------------------
# 3x3 / stride-2 max pooling: separable row-max then col-max
# --------------------------------------------------------------------------

def _max3_kernel(a_ref, b_ref, c_ref, o_ref):
    o_ref[...] = jnp.maximum(jnp.maximum(a_ref[...], b_ref[...]), c_ref[...])


@jax.jit
def max3(a, b, c):
    m, ch = a.shape
    tm, mp = _pick_tile(m, 512, 8)
    tc, cp = _pick_tile(ch, 512, 128)

    def pad(v):
        if (mp, cp) == (m, ch):
            return v
        return jnp.full((mp, cp), -1e30, jnp.float32).at[:m, :ch].set(v)

    out = pl.pallas_call(
        _max3_kernel,
        out_shape=jax.ShapeDtypeStruct((mp, cp), jnp.float32),
        grid=(mp // tm, cp // tc),
        in_specs=[pl.BlockSpec((tm, tc), lambda i, j: (i, j))] * 3,
        out_specs=pl.BlockSpec((tm, tc), lambda i, j: (i, j)),
        compiler_params=pltpu.CompilerParams(
            dimension_semantics=("parallel", "parallel")),
    )(pad(a), pad(b), pad(c))
    if (mp, cp) != (m, ch):
        out = out[:m, :ch]
    return out


@jax.jit
def maxpool3x3s2(x):
    """3x3 / stride-2 / pad-1 max pool (separable, no 9x stacked blow-up)."""
    n, h, w, c = x.shape
    oh = (h + 2 - 3) // 2 + 1
    ow = (w + 2 - 3) // 2 + 1
    xp = jnp.pad(x, ((0, 0), (1, 1), (1, 1), (0, 0)), constant_values=-1e30)
    hp = h + 2
    cols = [xp[:, :, j:j + 2 * (ow - 1) + 1:2, :].reshape(n * hp * ow, c)
            for j in range(3)]
    rmax = max3(*cols).reshape(n, hp, ow, c)
    rows = [rmax[:, i:i + 2 * (oh - 1) + 1:2, :, :].reshape(n * oh * ow, c)
            for i in range(3)]
    return max3(*rows).reshape(n, oh, ow, c)


# --------------------------------------------------------------------------
# CBAM attention helpers and the bottleneck block
# --------------------------------------------------------------------------

def channel_attention_raw(x_nlc, fc1_w, fc2_w):
    """CBAM channel attention (shared MLP on avg/max pooled features).

    Returns raw (pre-sigmoid) logits (N, 2, C); the gate sigmoid(raw0+raw1)
    is applied downstream (fused into sa_reduce / cbam_apply)."""
    n, _, c = x_nlc.shape
    hidden = fc1_w.shape[0]
    avg, mx = pool_avg_max(x_nlc)                            # (N, 1, C) each
    v = jnp.concatenate([avg, mx], axis=1).reshape(2 * n, c)
    w1 = fc1_w.reshape(hidden, c).T                          # (C, hidden)
    w2 = fc2_w.reshape(c, hidden).T                          # (hidden, C)
    h1 = matmul_affine(v, w1, act="relu")                    # (2N, hidden)
    h2 = matmul_affine(h1, w2, act="none")                   # (2N, C)
    return h2.reshape(n, 2, c)


def spatial_attention(x_nlc, ca_raw, conv_w, h, w):
    """CBAM spatial attention gate computed on the channel-gated features.

    Returns sigmoid gate (N, H*W, 1); sigmoid is fused into the conv matmul."""
    n, l, _ = x_nlc.shape
    mean_c, max_c = sa_reduce(x_nlc, ca_raw)                 # (N, L, 1) each
    feat = jnp.concatenate([mean_c, max_c], axis=-1).reshape(n, h, w, 2)
    sa = conv_bn_act(feat, conv_w, None, 1, 3, "sigmoid")    # (N, H, W, 1)
    return sa.reshape(n, l, 1)


def bottleneck(x, p, stride):
    out = conv_bn_act(x, p["conv1_w"], p["bn1"], 1, 0, "relu")
    out = conv_bn_act(out, p["conv2_w"], p["bn2"], stride, 1, "relu")
    out = conv_bn_act(out, p["conv3_w"], p["bn3"], 1, 0, "none")
    n2, h2, w2, c2 = out.shape
    out_l = out.reshape(n2, h2 * w2, c2)

    ca_raw = channel_attention_raw(out_l, p["ca_fc1"], p["ca_fc2"])  # (N,2,C)
    sa = spatial_attention(out_l, ca_raw, p["sa_conv"], h2, w2)      # (N,L,1)

    if "down_conv" in p:
        res = conv_bn_act(x, p["down_conv"], p["down_bn"], stride, 0, "none")
    else:
        res = x
    y = cbam_apply(out_l, ca_raw, sa, res.reshape(n2, h2 * w2, c2))
    return y.reshape(n2, h2, w2, c2)


LAYERS_CFG = [(64, 3, 1), (128, 4, 2), (256, 6, 2), (512, 3, 2)]


def cbam_resnet50_base_forward(x_nchw, params):
    # layout: accept NCHW (PyTorch), compute in NHWC (channels -> TPU lanes).
    x = jnp.transpose(x_nchw, (0, 2, 3, 1)).astype(jnp.float32)
    x = conv_bn_act(x, params["conv1_w"], params["bn1"], 2, 3, "relu")
    x = maxpool3x3s2(x)
    for li, (_, blocks, stride0) in enumerate(LAYERS_CFG):
        for bi in range(blocks):
            s = stride0 if bi == 0 else 1
            x = bottleneck(x, params["layers"][li][bi], s)
    n, h, w, c = x.shape
    # avgpool (AvgPool2d(7,1)) + avgpool2 (AdaptiveAvgPool2d((1,1))) == global
    # spatial mean at the canonical input size, then view(N, C).
    avg, _ = pool_avg_max(x.reshape(n, h * w, c))
    return avg.reshape(n, c)


# --------------------------------------------------------------------------
# Deterministic parameter construction (ResNet50-CBAM shapes)
# --------------------------------------------------------------------------

class KeyGen:
    def __init__(self, seed=0):
        self.key = jax.random.PRNGKey(seed)
        self.i = 0

    def __call__(self):
        self.i += 1
        return jax.random.fold_in(self.key, self.i)


def conv_init(key, cout, cin, kh, kw):
    fan_in = cin * kh * kw
    return (jax.random.normal(key, (cout, cin, kh, kw), jnp.float32)
            * (2.0 / fan_in) ** 0.5)


def bn_init(c):
    return dict(gamma=jnp.ones((c,), jnp.float32),
                beta=jnp.zeros((c,), jnp.float32),
                mean=jnp.zeros((c,), jnp.float32),
                var=jnp.ones((c,), jnp.float32))


def make_bottleneck_params(kg, inplanes, planes, stride):
    outc = planes * 4
    p = dict()
    p["conv1_w"] = conv_init(kg(), planes, inplanes, 1, 1)
    p["bn1"] = bn_init(planes)
    p["conv2_w"] = conv_init(kg(), planes, planes, 3, 3)
    p["bn2"] = bn_init(planes)
    p["conv3_w"] = conv_init(kg(), outc, planes, 1, 1)
    p["bn3"] = bn_init(outc)
    hidden = outc // 16
    p["ca_fc1"] = conv_init(kg(), hidden, outc, 1, 1)   # Conv2d(C, C/16, 1)
    p["ca_fc2"] = conv_init(kg(), outc, hidden, 1, 1)   # Conv2d(C/16, C, 1)
    p["sa_conv"] = conv_init(kg(), 1, 2, 7, 7)          # Conv2d(2, 1, 7, pad=3)
    if stride != 1 or inplanes != outc:
        p["down_conv"] = conv_init(kg(), outc, inplanes, 1, 1)
        p["down_bn"] = bn_init(outc)
    return p


def make_params(seed=0):
    kg = KeyGen(seed)
    params = dict()
    params["conv1_w"] = conv_init(kg(), 64, 3, 7, 7)
    params["bn1"] = bn_init(64)
    inplanes = 64
    layers = []
    for planes, blocks, stride in LAYERS_CFG:
        blk_params = []
        for b in range(blocks):
            s = stride if b == 0 else 1
            blk_params.append(make_bottleneck_params(kg, inplanes, planes, s))
            inplanes = planes * 4
        layers.append(blk_params)
    params["layers"] = layers
    return params


# --------------------------------------------------------------------------

if __name__ == "__main__":
    key = jax.random.PRNGKey(0)
    # Small but architecture-consistent input: NCHW, 3 channels (RGB), 64x64.
    x = jax.random.normal(key, (2, 3, 64, 64), jnp.float32)
    params = make_params(seed=0)

    out = cbam_resnet50_base_forward(x, params)
    out = jax.block_until_ready(out)

    assert out.shape == (2, 2048), out.shape
    assert bool(jnp.all(jnp.isfinite(out)))
    print("KERNEL_OK")
</pallas_src>

<mosaic_0001>
module attributes {stable_mosaic.version = 11 : i64} {
  func.func @_mm_kernel(%arg0: i32, %arg1: i32, %arg2: i32, %arg3: memref<256x147xbf16, #tpu.memory_space<vmem>>, %arg4: memref<147x64xbf16, #tpu.memory_space<vmem>>, %arg5: memref<1x64xf32, #tpu.memory_space<vmem>>, %arg6: memref<1x64xf32, #tpu.memory_space<vmem>>, %arg7: memref<256x64xf32, #tpu.memory_space<vmem>>) attributes {dimension_semantics = [#tpu.dimension_semantics<parallel>, #tpu.dimension_semantics<parallel>, #tpu.dimension_semantics<arbitrary>], iteration_bounds = array<i64: 8, 1, 1>, scalar_prefetch = 0 : i64, scratch_operands = 0 : i64, tpu.core_type = #tpu.core_type<tc>, window_params = [{transform_indices = @transform_0, window_bounds = array<i64: 256, 147>}, {transform_indices = @transform_1, window_bounds = array<i64: 147, 64>}, {transform_indices = @transform_2, window_bounds = array<i64: 1, 64>}, {transform_indices = @transform_3, window_bounds = array<i64: 1, 64>}, {transform_indices = @transform_4, window_bounds = array<i64: 256, 64>}]} {
    %c0_i32 = arith.constant 0 : i32
    %0 = arith.cmpi eq, %arg2, %c0_i32 : i32
    %1 = arith.extui %0 : i1 to i32
    %c0_i32_0 = arith.constant 0 : i32
    %2 = arith.cmpi ne, %1, %c0_i32_0 : i32
    scf.if %2 {
      %cst_10 = arith.constant 0.000000e+00 : f32
      %12 = vector.broadcast %cst_10 : f32 to vector<256x64xf32>
      %c0_11 = arith.constant 0 : index
      %c0_12 = arith.constant 0 : index
      %13 = vector.load %arg7[%c0_11, %c0_12] : memref<256x64xf32, #tpu.memory_space<vmem>>, vector<256x64xf32>
      tpu.vector_store %arg7[%c0_11, %c0_12], %12 {strides = array<i32>} : memref<256x64xf32, #tpu.memory_space<vmem>>, vector<256x64xf32>,
    } else {
    }
    %c0 = arith.constant 0 : index
    %c0_1 = arith.constant 0 : index
    %3 = vector.load %arg7[%c0, %c0_1] : memref<256x64xf32, #tpu.memory_space<vmem>>, vector<256x64xf32>
    %c0_2 = arith.constant 0 : index
    %c0_3 = arith.constant 0 : index
    %4 = vector.load %arg3[%c0_2, %c0_3] : memref<256x147xbf16, #tpu.memory_space<vmem>>, vector<256x147xbf16>
    %c0_4 = arith.constant 0 : index
    %c0_5 = arith.constant 0 : index
    %5 = vector.load %arg4[%c0_4, %c0_5] : memref<147x64xbf16, #tpu.memory_space<vmem>>, vector<147x64xbf16>
    %cst = arith.constant dense<0.000000e+00> : vector<256x64xf32>
    %6 = tpu.matmul %4, %5, %cst {dimension_numbers = #tpu.dot_dimension_numbers<[1], [0], [0], [1], [0, 0, 1, 1], [], []>} : vector<256x147xbf16>, vector<147x64xbf16>, vector<256x64xf32> -> vector<256x64xf32>
    %7 = arith.addf %3, %6 : vector<256x64xf32>
    %c0_6 = arith.constant 0 : index
    %c0_7 = arith.constant 0 : index
    %8 = vector.load %arg7[%c0_6, %c0_7] : memref<256x64xf32, #tpu.memory_space<vmem>>, vector<256x64xf32>
    tpu.vector_store %arg7[%c0_6, %c0_7], %7 {strides = array<i32>} : memref<256x64xf32, #tpu.memory_space<vmem>>, vector<256x64xf32>,
    %c0_i32_8 = arith.constant 0 : i32
    %9 = arith.cmpi eq, %arg2, %c0_i32_8 : i32
    %10 = arith.extui %9 : i1 to i32
    %c0_i32_9 = arith.constant 0 : i32
    %11 = arith.cmpi ne, %10, %c0_i32_9 : i32
    scf.if %11 {
      %c0_10 = arith.constant 0 : index
      %c0_11 = arith.constant 0 : index
      %12 = vector.load %arg7[%c0_10, %c0_11] : memref<256x64xf32, #tpu.memory_space<vmem>>, vector<256x64xf32>
      %c0_12 = arith.constant 0 : index
      %c0_13 = arith.constant 0 : index
      %13 = vector.load %arg5[%c0_12, %c0_13] : memref<1x64xf32, #tpu.memory_space<vmem>>, vector<1x64xf32>
      %14 = vector.broadcast %13 : vector<1x64xf32> to vector<256x64xf32>
      %15 = arith.mulf %12, %14 : vector<256x64xf32>
      %c0_14 = arith.constant 0 : index
      %c0_15 = arith.constant 0 : index
      %16 = vector.load %arg6[%c0_14, %c0_15] : memref<1x64xf32, #tpu.memory_space<vmem>>, vector<1x64xf32>
      %17 = vector.broadcast %16 : vector<1x64xf32> to vector<256x64xf32>
      %18 = arith.addf %15, %17 : vector<256x64xf32>
      %cst_16 = arith.constant 0.000000e+00 : f32
      %19 = vector.broadcast %cst_16 : f32 to vector<256x64xf32>
      %20 = arith.maximumf %18, %19 : vector<256x64xf32>
      %c0_17 = arith.constant 0 : index
      %c0_18 = arith.constant 0 : index
      %21 = vector.load %arg7[%c0_17, %c0_18] : memref<256x64xf32, #tpu.memory_space<vmem>>, vector<256x64xf32>
      tpu.vector_store %arg7[%c0_17, %c0_18], %20 {strides = array<i32>} : memref<256x64xf32, #tpu.memory_space<vmem>>, vector<256x64xf32>,
    } else {
    }
    return
  }
  func.func @transform_0(%arg0: i32, %arg1: i32, %arg2: i32) -> (i32, i32) {
    %c0_i32 = arith.constant 0 : i32
    return %arg0, %arg2 : i32, i32
  }
  func.func @transform_1(%arg0: i32, %arg1: i32, %arg2: i32) -> (i32, i32) {
    %c0_i32 = arith.constant 0 : i32
    return %arg2, %arg1 : i32, i32
  }
  func.func @transform_2(%arg0: i32, %arg1: i32, %arg2: i32) -> (i32, i32) {
    %c0_i32 = arith.constant 0 : i32
    %c0_i32_0 = arith.constant 0 : i32
    return %c0_i32, %arg1 : i32, i32
  }
  func.func @transform_3(%arg0: i32, %arg1: i32, %arg2: i32) -> (i32, i32) {
    %c0_i32 = arith.constant 0 : i32
    %c0_i32_0 = arith.constant 0 : i32
    return %c0_i32, %arg1 : i32, i32
  }
  func.func @transform_4(%arg0: i32, %arg1: i32, %arg2: i32) -> (i32, i32) {
    %c0_i32 = arith.constant 0 : i32
    return %arg0, %arg1 : i32, i32
  }
}

</mosaic_0001>

<bundles_post_ra>
// kernel: matmul_affine.1
= control target key start
LH: loop header
LB: loop body
LE: loop exit
PB: predicated region body
PF: predicated region fallthrough
CT: control target
= control target key end

     0   :  { %s1448_s15 = smov 0   ;;  %s1450_s16 = smov 0   ;;  %s1913_s0 = inlined_call_operand.vmem [shape: bf16[2048,147], index: 0, kind: input, shape index: {}]   ;;  %s1914_s1 = inlined_call_operand.vmem [shape: bf16[147,64], index: 1, kind: input, shape index: {}]   ;;  %s1915_s2 = inlined_call_operand.vmem [shape: f32[1,64], index: 2, kind: input, shape index: {}]   ;;  %s1916_s3 = inlined_call_operand.vmem [shape: f32[1,64], index: 3, kind: input, shape index: {}]   ;;  %s1917_s4 = inlined_call_operand.vmem [shape: f32[2048,64], index: 4, kind: output, shape index: {}]  }
   0x1   :  { %s1452_s17 = smov 0  }
   0x2 LB: > { %s33_s18 = sadd.s32 1, %s1414_s16  ;;  %p1222_p0 = scmp.ge.s32.totalorder %s1418_s17, 1  ;;  %s1418_s17 = sphi %s1452_s17, %s14_s17   ;;  %s1414_s16 = sphi %s1450_s16, %s1919_s16   ;;  %s1410_s15 = sphi %s1448_s15, %s1918_s15  }
   0x3   : > { %p35_p1 = scmp.ge.s32.totalorder %s33_s18, 8  ;;  %p224_p2 = scmp.lt.s32.totalorder %s1418_s17, 9 }
   0x5   : > { %s1921_s18 = smov (%p35_p1, %s33_s18), 0  ;;  %p225_p3 = pnand %p1222_p0, %p224_p2 }
   0x6   : > { %v1338_v0 = vld [vmem:[%s1914_s1] sm:$0xff] (!%p225_p3)   ;;  %v1420_v1 = vmov (!%p225_p3), 0   ;;  %v1339_v2 = vld [vmem:[%s1914_s1 + $0x8] sm:$0xff] (!%p225_p3)   ;;  %v1340_v3 = vld [vmem:[%s1914_s1 + $0x10] sm:$0xff] (!%p225_p3)   ;;  %s1223_s25 = sshll.u32 (!%p225_p3), %s1410_s15, 5  ;;  %vm313_vm0 = vcmask (!%p225_p3), 523264  }
   0x7   : > { %228 = sbr.rel (%p225_p3) target bundleno = 335 (0x14f), region = 36  ;;  %686 = vmatprep.subr.bf16.mxu0 (!%p225_p3), %v1420_v1  ;;  %1291 = vmatprep.subr.bf16.mxu1 (!%p225_p3), %v1420_v1  ;;  %p274_p4 = scmp.lt.s32.totalorder (!%p225_p3), %s1223_s25, 255  ;;  %v1341_v4 = vld [vmem:[%s1914_s1 + $0x18] sm:$0xff] (!%p225_p3)   ;;  %v1342_v5 = vld [vmem:[%s1914_s1 + $0x20] sm:$0xff] (!%p225_p3)   ;;  %vm630_vm1 = vcmask (!%p225_p3), 154624   ;;  %v1421_v6 = vmov (!%p225_p3), 0.0  }
   0x8   : > { %687 = vmatpush1.bf16.msra.mxu0 (!%p225_p3), %v1338_v0  ;;  %1301 = vmatpush1.bf16.msra.mxu1 (!%p225_p3), %v1338_v0  ;;  %v1343_v9 = vld [vmem:[%s1914_s1 + $0x28] sm:$0xff] (!%p225_p3)   ;;  %v1344_v10 = vld [vmem:[%s1914_s1 + $0x30] sm:$0xff] (!%p225_p3)   ;;  %vm679_vm2 = vcmask (!%p225_p3), 1040384   ;;  %v1345_v11 = vld [vmem:[%s1914_s1 + $0x38] sm:$0xff] (!%p225_p3)   ;;  %vm680_vm3 = vcmask (!%p225_p3), 1041408   ;;  %v1422_v12 = vmov (!%p225_p3), 65535  }
   0x9   : > { %688 = vmatprep.subr.bf16.mxu0 (!%p225_p3), %v1420_v1  ;;  %1292 = vmatprep.subr.bf16.mxu1 (!%p225_p3), %v1420_v1  ;;  %v681_v13 = vsel (!%p225_p3), %vm679_vm2, 4294967295, %v1422_v12  ;;  %v1346_v14 = vld [vmem:[%s1914_s1 + $0x40] sm:$0xff] (!%p225_p3)   ;;  %v1347_v15 = vld [vmem:[%s1914_s1 + $0x48] ss:$0 sps:$4 sm:$0x33] (!%p225_p3)  }
   0xa   : > { %v682_v16 = vsel (!%p225_p3), %vm680_vm3, %v681_v13, 0  ;;  %v1663_v12 = vld [vmem:[%s1916_s3] ss:$0 sm:$0xff] (!%p225_p3) }
   0xb   : > { %v684_v17 = vand.u32 (!%p225_p3), %v1347_v15, %v682_v16 }
   0xc   : > { %689 = vmatpush1.bf16.msra.mxu0 (!%p225_p3), %v1339_v2  ;;  %1302 = vmatpush1.bf16.msra.mxu1 (!%p225_p3), %v1339_v2  ;;  %v1655_v2 = vld [vmem:[%s1915_s2] ss:$0 sm:$0xff] (!%p225_p3) }
   0xd   : > { %690 = vmatprep.subr.bf16.mxu0 (!%p225_p3), %v1420_v1  ;;  %1293 = vmatprep.subr.bf16.mxu1 (!%p225_p3), %v1420_v1 }
   0xe   : > { %s1923_s25 = smov (!%p274_p4, %s1223_s25), 255 }
   0xf   : > { %s1290_s28 = sshll.u32 %s1923_s25, 3 }
  0x10   : > { %691 = vmatpush1.bf16.msra.mxu0 %v1340_v3  ;;  %1303 = vmatpush1.bf16.msra.mxu1 %v1340_v3  ;;  %s1489_s5 = scalar_lea.vmem %s1913_s0, %s1290_s28  ;;  %s1494_s8 = scalar_lea.vmem %s1917_s4, %s1290_s28 }
  0x11   : > { %692 = vmatprep.subr.bf16.mxu0 %v1420_v1  ;;  %1294 = vmatprep.subr.bf16.mxu1 %v1420_v1  ;;  %314 = vst.msk [vmem:[%s1494_s8] sm:$0xff] %vm313_vm0, %v1421_v6  ;;  %315 = vst.msk [vmem:[%s1494_s8 + $0x8] sm:$0xff] %vm313_vm0, %v1421_v6  ;;  %v1350_v7 = vld [vmem:[%s1489_s5 + $0x4] ss:$8 sps:$4 sm:$0xff]   ;;  %v1348_v18 = vld [vmem:[%s1489_s5] ss:$8 sps:$4 sm:$0xff]  }
  0x12   : > { %316 = vst.msk [vmem:[%s1494_s8 + $0x10] sm:$0xff] %vm313_vm0, %v1421_v6  ;;  %317 = vst.msk [vmem:[%s1494_s8 + $0x18] sm:$0xff] %vm313_vm0, %v1421_v6  ;;  %v1353_v8 = vld [vmem:[%s1489_s5 + $0x84] ss:$8 sps:$4 sm:$0xff]   ;;  %1270 = vmatprep.mubr.msk.bf16.mxu0 %vm630_vm1, %v1350_v7  ;;  %v1351_v19 = vld [vmem:[%s1489_s5 + $0x80] ss:$8 sps:$4 sm:$0xff]  }
  0x13   : > { %318 = vst.msk [vmem:[%s1494_s8 + $0x20] sm:$0xff] %vm313_vm0, %v1421_v6  ;;  %319 = vst.msk [vmem:[%s1494_s8 + $0x28] sm:$0xff] %vm313_vm0, %v1421_v6  ;;  %1278 = vmatprep.mubr.msk.bf16.mxu1 %vm630_vm1, %v1353_v8  ;;  %v1354_v20 = vld [vmem:[%s1489_s5 + $0x14] ss:$8 sps:$4 sm:$0xff]   ;;  %v1358_v22 = vld [vmem:[%s1489_s5 + $0x10] ss:$8 sps:$4 sm:$0xff]  }
  0x14   : > { %320 = vst.msk [vmem:[%s1494_s8 + $0x30] sm:$0xff] %vm313_vm0, %v1421_v6  ;;  %321 = vst.msk [vmem:[%s1494_s8 + $0x38] sm:$0xff] %vm313_vm0, %v1421_v6  ;;  %693 = vmatpush1.bf16.msra.mxu0 %v1341_v4  ;;  %1304 = vmatpush1.bf16.msra.mxu1 %v1341_v4  ;;  %v1356_v21 = vld [vmem:[%s1489_s5 + $0x94] ss:$8 sps:$4 sm:$0xff]   ;;  %v1359_v23 = vld [vmem:[%s1489_s5 + $0x90] ss:$8 sps:$4 sm:$0xff]  }
  0x15   : > { %322 = vst.msk [vmem:[%s1494_s8 + $0x40] sm:$0xff] %vm313_vm0, %v1421_v6  ;;  %323 = vst.msk [vmem:[%s1494_s8 + $0x48] sm:$0xff] %vm313_vm0, %v1421_v6  ;;  %694 = vmatprep.subr.bf16.mxu0 %v1420_v1  ;;  %1295 = vmatprep.subr.bf16.mxu1 %v1420_v1  ;;  %v1360_v24 = vld [vmem:[%s1489_s5 + $0x24] ss:$8 sps:$4 sm:$0xff]   ;;  %v1364_v26 = vld [vmem:[%s1489_s5 + $0x20] ss:$8 sps:$4 sm:$0xff]  }
  0x16   : > { %324 = vst.msk [vmem:[%s1494_s8 + $0x50] sm:$0xff] %vm313_vm0, %v1421_v6  ;;  %325 = vst.msk [vmem:[%s1494_s8 + $0x58] sm:$0xff] %vm313_vm0, %v1421_v6  ;;  %v1362_v25 = vld [vmem:[%s1489_s5 + $0xa4] ss:$8 sps:$4 sm:$0xff]   ;;  %v1365_v27 = vld [vmem:[%s1489_s5 + $0xa0] ss:$8 sps:$4 sm:$0xff]  }
  0x17   : > { %326 = vst.msk [vmem:[%s1494_s8 + $0x60] sm:$0xff] %vm313_vm0, %v1421_v6  ;;  %327 = vst.msk [vmem:[%s1494_s8 + $0x68] sm:$0xff] %vm313_vm0, %v1421_v6  ;;  %v1366_v28 = vld [vmem:[%s1489_s5 + $0x34] ss:$8 sps:$4 sm:$0xff]   ;;  %v1370_v30 = vld [vmem:[%s1489_s5 + $0x30] ss:$8 sps:$4 sm:$0xff]  }
  0x18   : > { %328 = vst.msk [vmem:[%s1494_s8 + $0x70] sm:$0xff] %vm313_vm0, %v1421_v6  ;;  %329 = vst.msk [vmem:[%s1494_s8 + $0x78] sm:$0xff] %vm313_vm0, %v1421_v6  ;;  %695 = vmatpush1.bf16.msra.mxu0 %v1342_v5  ;;  %1305 = vmatpush1.bf16.msra.mxu1 %v1342_v5  ;;  %v1368_v29 = vld [vmem:[%s1489_s5 + $0xb4] ss:$8 sps:$4 sm:$0xff]   ;;  %v1371_v31 = vld [vmem:[%s1489_s5 + $0xb0] ss:$8 sps:$4 sm:$0xff]  }
  0x19   : > { %330 = vst.msk [vmem:[%s1494_s8 + $0x80] sm:$0xff] %vm313_vm0, %v1421_v6  ;;  %331 = vst.msk [vmem:[%s1494_s8 + $0x88] sm:$0xff] %vm313_vm0, %v1421_v6  ;;  %696 = vmatprep.subr.bf16.mxu0 %v1420_v1  ;;  %1296 = vmatprep.subr.bf16.mxu1 %v1420_v1  ;;  %v1372_v32 = vld [vmem:[%s1489_s5 + $0x44] ss:$8 sps:$4 sm:$0xff]   ;;  %v1376_v34 = vld [vmem:[%s1489_s5 + $0x40] ss:$8 sps:$4 sm:$0xff]  }
  0x1a   : > { %332 = vst.msk [vmem:[%s1494_s8 + $0x90] sm:$0xff] %vm313_vm0, %v1421_v6  ;;  %333 = vst.msk [vmem:[%s1494_s8 + $0x98] sm:$0xff] %vm313_vm0, %v1421_v6  ;;  %v1374_v33 = vld [vmem:[%s1489_s5 + $0xc4] ss:$8 sps:$4 sm:$0xff]   ;;  %v1377_v35 = vld [vmem:[%s1489_s5 + $0xc0] ss:$8 sps:$4 sm:$0xff]  }
  0x1b   : > { %334 = vst.msk [vmem:[%s1494_s8 + $0xa0] sm:$0xff] %vm313_vm0, %v1421_v6  ;;  %335 = vst.msk [vmem:[%s1494_s8 + $0xa8] sm:$0xff] %vm313_vm0, %v1421_v6  ;;  %v1378_v36 = vld [vmem:[%s1489_s5 + $0x54] ss:$8 sps:$4 sm:$0xff]   ;;  %v1382_v38 = vld [vmem:[%s1489_s5 + $0x50] ss:$8 sps:$4 sm:$0xff]  }
  0x1c   : > { %336 = vst.msk [vmem:[%s1494_s8 + $0xb0] sm:$0xff] %vm313_vm0, %v1421_v6  ;;  %337 = vst.msk [vmem:[%s1494_s8 + $0xb8] sm:$0xff] %vm313_vm0, %v1421_v6  ;;  %697 = vmatpush1.bf16.msra.mxu0 %v1343_v9  ;;  %1306 = vmatpush1.bf16.msra.mxu1 %v1343_v9  ;;  %v1380_v37 = vld [vmem:[%s1489_s5 + $0xd4] ss:$8 sps:$4 sm:$0xff]   ;;  %v1383_v39 = vld [vmem:[%s1489_s5 + $0xd0] ss:$8 sps:$4 sm:$0xff]  }
  0x1d   : > { %338 = vst.msk [vmem:[%s1494_s8 + $0xc0] sm:$0xff] %vm313_vm0, %v1421_v6  ;;  %339 = vst.msk [vmem:[%s1494_s8 + $0xc8] sm:$0xff] %vm313_vm0, %v1421_v6  ;;  %698 = vmatprep.subr.bf16.mxu0 %v1420_v1  ;;  %1297 = vmatprep.subr.bf16.mxu1 %v1420_v1  ;;  %v1384_v40 = vld [vmem:[%s1489_s5 + $0x64] ss:$8 sps:$4 sm:$0xff]   ;;  %v1388_v42 = vld [vmem:[%s1489_s5 + $0x60] ss:$8 sps:$4 sm:$0xff]  }
  0x1e   : > { %340 = vst.msk [vmem:[%s1494_s8 + $0xd0] sm:$0xff] %vm313_vm0, %v1421_v6  ;;  %341 = vst.msk [vmem:[%s1494_s8 + $0xd8] sm:$0xff] %vm313_vm0, %v1421_v6  ;;  %v1386_v41 = vld [vmem:[%s1489_s5 + $0xe4] ss:$8 sps:$4 sm:$0xff]   ;;  %v1389_v43 = vld [vmem:[%s1489_s5 + $0xe0] ss:$8 sps:$4 sm:$0xff]  }
  0x1f   : > { %342 = vst.msk [vmem:[%s1494_s8 + $0xe0] sm:$0xff] %vm313_vm0, %v1421_v6  ;;  %343 = vst.msk [vmem:[%s1494_s8 + $0xe8] sm:$0xff] %vm313_vm0, %v1421_v6  ;;  %v1390_v44 = vld [vmem:[%s1489_s5 + $0x74] ss:$8 sps:$4 sm:$0xff]   ;;  %v1394_v46 = vld [vmem:[%s1489_s5 + $0x70] ss:$8 sps:$4 sm:$0xff]  }
  0x20   : > { %344 = vst.msk [vmem:[%s1494_s8 + $0xf0] sm:$0xff] %vm313_vm0, %v1421_v6  ;;  %345 = vst.msk [vmem:[%s1494_s8 + $0xf8] sm:$0xff] %vm313_vm0, %v1421_v6  ;;  %699 = vmatpush1.bf16.msra.mxu0 %v1344_v10  ;;  %1307 = vmatpush1.bf16.msra.mxu1 %v1344_v10  ;;  %v1392_v45 = vld [vmem:[%s1489_s5 + $0xf4] ss:$8 sps:$4 sm:$0xff]   ;;  %v1395_v47 = vld [vmem:[%s1489_s5 + $0xf0] ss:$8 sps:$4 sm:$0xff]  }
  0x21   : > { %700 = vmatprep.subr.bf16.mxu0 %v1420_v1  ;;  %1298 = vmatprep.subr.bf16.mxu1 %v1420_v1  ;;  %v346_v48 = vld [vmem:[%s1494_s8] sm:$0xff]  ;;  %v347_v52 = vld [vmem:[%s1494_s8 + $0x8] sm:$0xff]  ;;  %v348_v0 = vld [vmem:[%s1494_s8 + $0x10] sm:$0xff] }
  0x22   : > { %v362_v49 = vld [vmem:[%s1494_s8 + $0x80] sm:$0xff]  ;;  %v363_v53 = vld [vmem:[%s1494_s8 + $0x88] sm:$0xff]  ;;  %v349_v5 = vld [vmem:[%s1494_s8 + $0x18] sm:$0xff] }
  0x23   : > { %v365_v6 = vld [vmem:[%s1494_s8 + $0x98] sm:$0xff] }
  0x24   : > { %701 = vmatpush1.bf16.msra.mxu0 %v1345_v11  ;;  %1308 = vmatpush1.bf16.msra.mxu1 %v1345_v11 }
  0x25   : > { %702 = vmatprep.subr.bf16.mxu0 %v1420_v1  ;;  %1299 = vmatprep.subr.bf16.mxu1 %v1420_v1 }
  0x28   : > { %703 = vmatpush1.bf16.msra.mxu0 %v1346_v14  ;;  %1309 = vmatpush1.bf16.msra.mxu1 %v1346_v14 }
  0x29   : > { %704 = vmatprep.subr.bf16.mxu0 %v1420_v1  ;;  %1300 = vmatprep.subr.bf16.mxu1 %v1420_v1  ;;  %v364_v1 = vld [vmem:[%s1494_s8 + $0x90] sm:$0xff] }
  0x2c   : > { %705 = vmatpush1.bf16.msra.mxu0 %v684_v17  ;;  %1310 = vmatpush1.bf16.msra.mxu1 %v684_v17 }
  0x2f   : > { %719 = vmatmul.mubr.bf16.vlgmr.msra.gmra.mrb[0].mxu0 %v1348_v18  ;;  %783 = vmatmul.mubr.bf16.vlgmr.msra.gmra.mrb[0].mxu1 %v1351_v19 }
  0x30   : > { %1271 = vmatprep.mubr.msk.bf16.mxu0 %vm630_vm1, %v1354_v20  ;;  %1279 = vmatprep.mubr.msk.bf16.mxu1 %vm630_vm1, %v1356_v21 }
  0x37   : > { %727 = vmatmul.mubr.bf16.gmra.mrb[4].mxu0 %v1358_v22  ;;  %791 = vmatmul.mubr.bf16.gmra.mrb[4].mxu1 %v1359_v23 }
  0x38   : > { %1272 = vmatprep.mubr.msk.bf16.mxu0 %vm630_vm1, %v1360_v24  ;;  %1280 = vmatprep.mubr.msk.bf16.mxu1 %vm630_vm1, %v1362_v25 }
  0x3f   : > { %735 = vmatmul.mubr.bf16.gmra.mrb[8].mxu0 %v1364_v26  ;;  %799 = vmatmul.mubr.bf16.gmra.mrb[8].mxu1 %v1365_v27 }
  0x40   : > { %1273 = vmatprep.mubr.msk.bf16.mxu0 %vm630_vm1, %v1366_v28  ;;  %1281 = vmatprep.mubr.msk.bf16.mxu1 %vm630_vm1, %v1368_v29  ;;  %v350_v28 = vld [vmem:[%s1494_s8 + $0x20] sm:$0xff] }
  0x41   : > { %v366_v29 = vld [vmem:[%s1494_s8 + $0xa0] sm:$0xff] }
  0x47   : > { %743 = vmatmul.mubr.bf16.gmra.mrb[12].mxu0 %v1370_v30  ;;  %807 = vmatmul.mubr.bf16.gmra.mrb[12].mxu1 %v1371_v31 }
  0x48   : > { %1274 = vmatprep.mubr.msk.bf16.mxu0 %vm630_vm1, %v1372_v32  ;;  %1282 = vmatprep.mubr.msk.bf16.mxu1 %vm630_vm1, %v1374_v33 }
  0x4f   : > { %751 = vmatmul.mubr.bf16.gmra.mrb[16].mxu0 %v1376_v34  ;;  %815 = vmatmul.mubr.bf16.gmra.mrb[16].mxu1 %v1377_v35 }
  0x50   : > { %1275 = vmatprep.mubr.msk.bf16.mxu0 %vm630_vm1, %v1378_v36  ;;  %1283 = vmatprep.mubr.msk.bf16.mxu1 %vm630_vm1, %v1380_v37  ;;  %v351_v36 = vld [vmem:[%s1494_s8 + $0x28] sm:$0xff] }
  0x51   : > { %v367_v37 = vld [vmem:[%s1494_s8 + $0xa8] sm:$0xff] }
  0x57   : > { %759 = vmatmul.mubr.bf16.gmra.mrb[20].mxu0 %v1382_v38  ;;  %823 = vmatmul.mubr.bf16.gmra.mrb[20].mxu1 %v1383_v39 }
  0x58   : > { %1276 = vmatprep.mubr.msk.bf16.mxu0 %vm630_vm1, %v1384_v40  ;;  %1284 = vmatprep.mubr.msk.bf16.mxu1 %vm630_vm1, %v1386_v41 }
  0x5f   : > { %767 = vmatmul.mubr.bf16.gmra.mrb[24].mxu0 %v1388_v42  ;;  %831 = vmatmul.mubr.bf16.gmra.mrb[24].mxu1 %v1389_v43 }
  0x60   : > { %1277 = vmatprep.mubr.msk.bf16.mxu0 %vm630_vm1, %v1390_v44  ;;  %1285 = vmatprep.mubr.msk.bf16.mxu1 %vm630_vm1, %v1392_v45 }
  0x67   : > { %775 = vmatmul.mubr.bf16.gmra.mrb[28].mxu0 %v1394_v46  ;;  %839 = vmatmul.mubr.bf16.gmra.mrb[28].mxu1 %v1395_v47 }
 0x102   : > { %v720_v50 = vpop.f32.mrb[0].mxu0  ;;  %v784_v51 = vpop.f32.mrb[0].mxu1 }
 0x103   : > { %v847_v54 = vadd.f32 %v720_v50, %v346_v48  ;;  %v863_v55 = vadd.f32 %v784_v51, %v362_v49  ;;  %v722_v56 = vpop.f32.mrb[1].mxu0  ;;  %v786_v57 = vpop.f32.mrb[1].mxu1 }
 0x104   : > { %v723_v58 = vpop.f32.mrb[2].mxu0  ;;  %v787_v59 = vpop.f32.mrb[2].mxu1 }
 0x105   : > { %880 = vst.msk [vmem:[%s1494_s8] sm:$0xff] %vm313_vm0, %v847_v54  ;;  %896 = vst.msk [vmem:[%s1494_s8 + $0x80] sm:$0xff] %vm313_vm0, %v863_v55  ;;  %v848_v60 = vadd.f32 %v723_v58, %v347_v52  ;;  %v864_v61 = vadd.f32 %v787_v59, %v363_v53  ;;  %v725_v62 = vpop.f32.mrb[3].mxu0  ;;  %v789_v63 = vpop.f32.mrb[3].mxu1 }
 0x107   : > { %881 = vst.msk [vmem:[%s1494_s8 + $0x8] sm:$0xff] %vm313_vm0, %v848_v60  ;;  %897 = vst.msk [vmem:[%s1494_s8 + $0x88] sm:$0xff] %vm313_vm0, %v864_v61  ;;  %v352_v60 = vld [vmem:[%s1494_s8 + $0x30] sm:$0xff] }
 0x108   : > { %v368_v61 = vld [vmem:[%s1494_s8 + $0xb0] sm:$0xff] }
 0x10a   : > { %v728_v3 = vpop.f32.mrb[4].mxu0  ;;  %v792_v4 = vpop.f32.mrb[4].mxu1 }
 0x10b   : > { %v849_v7 = vadd.f32 %v728_v3, %v348_v0  ;;  %v865_v8 = vadd.f32 %v792_v4, %v364_v1  ;;  %v730_v9 = vpop.f32.mrb[5].mxu0  ;;  %v794_v10 = vpop.f32.mrb[5].mxu1 }
 0x10c   : > { %v915_v11 = vld [vmem:[%s1494_s8] sm:$0xff]  ;;  %v731_v14 = vpop.f32.mrb[6].mxu0  ;;  %v795_v15 = vpop.f32.mrb[6].mxu1 }
 0x10d   : > { %v931_v13 = vld [vmem:[%s1494_s8 + $0x80] sm:$0xff]  ;;  %v954_v16 = vmul.f32 %v1655_v2, %v915_v11  ;;  %882 = vst.msk [vmem:[%s1494_s8 + $0x10] sm:$0xff] %vm313_vm0, %v849_v7  ;;  %898 = vst.msk [vmem:[%s1494_s8 + $0x90] sm:$0xff] %vm313_vm0, %v865_v8  ;;  %v850_v18 = vadd.f32 %v731_v14, %v349_v5  ;;  %v866_v19 = vadd.f32 %v795_v15, %v365_v6  ;;  %v733_v20 = vpop.f32.mrb[7].mxu0  ;;  %v797_v21 = vpop.f32.mrb[7].mxu1  ;;  %v353_v5 = vld [vmem:[%s1494_s8 + $0x38] sm:$0xff] }
 0x10e   : > { %v970_v17 = vmul.f32 %v1655_v2, %v931_v13  ;;  %v916_v22 = vld [vmem:[%s1494_s8 + $0x8] sm:$0xff]  ;;  %v369_v6 = vld [vmem:[%s1494_s8 + $0xb8] sm:$0xff] }
 0x10f   : > { %v932_v23 = vld [vmem:[%s1494_s8 + $0x88] sm:$0xff]  ;;  %v993_v24 = vadd.f32 %v1663_v12, %v954_v16  ;;  %v955_v26 = vmul.f32 %v1655_v2, %v916_v22  ;;  %883 = vst.msk [vmem:[%s1494_s8 + $0x18] sm:$0xff] %vm313_vm0, %v850_v18  ;;  %899 = vst.msk [vmem:[%s1494_s8 + $0x98] sm:$0xff] %vm313_vm0, %v866_v19 }
 0x110   : > { %v1009_v25 = vadd.f32 %v1663_v12, %v970_v17  ;;  %v971_v27 = vmul.f32 %v1655_v2, %v932_v23 }
 0x111   : > { %v1025_v30 = vmax.f32 %v993_v24, 0.0  ;;  %v994_v32 = vadd.f32 %v1663_v12, %v955_v26 }
 0x112   : > { %v1041_v31 = vmax.f32 %v1009_v25, 0.0  ;;  %v1010_v33 = vadd.f32 %v1663_v12, %v971_v27  ;;  %v736_v34 = vpop.f32.mrb[8].mxu0  ;;  %v800_v35 = vpop.f32.mrb[8].mxu1 }
 0x113   : > { %1057 = vst.msk [vmem:[%s1494_s8] sm:$0xff] %vm313_vm0, %v1025_v30  ;;  %v1026_v38 = vmax.f32 %v994_v32, 0.0  ;;  %v851_v40 = vadd.f32 %v736_v34, %v350_v28  ;;  %v867_v41 = vadd.f32 %v800_v35, %v366_v29  ;;  %v738_v42 = vpop.f32.mrb[9].mxu0  ;;  %v802_v43 = vpop.f32.mrb[9].mxu1  ;;  %v354_v30 = vld [vmem:[%s1494_s8 + $0x40] sm:$0xff] }
 0x114   : > { %1073 = vst.msk [vmem:[%s1494_s8 + $0x80] sm:$0xff] %vm313_vm0, %v1041_v31  ;;  %v1042_v39 = vmax.f32 %v1010_v33, 0.0  ;;  %v917_v44 = vld [vmem:[%s1494_s8 + $0x10] sm:$0xff]  ;;  %v739_v46 = vpop.f32.mrb[10].mxu0  ;;  %v803_v47 = vpop.f32.mrb[10].mxu1  ;;  %v370_v31 = vld [vmem:[%s1494_s8 + $0xc0] sm:$0xff] }
 0x115   : > { %v933_v45 = vld [vmem:[%s1494_s8 + $0x90] sm:$0xff]  ;;  %1058 = vst.msk [vmem:[%s1494_s8 + $0x8] sm:$0xff] %vm313_vm0, %v1026_v38  ;;  %v956_v48 = vmul.f32 %v1655_v2, %v917_v44  ;;  %884 = vst.msk [vmem:[%s1494_s8 + $0x20] sm:$0xff] %vm313_vm0, %v851_v40  ;;  %v852_v50 = vadd.f32 %v739_v46, %v351_v36  ;;  %v868_v51 = vadd.f32 %v803_v47, %v367_v37  ;;  %v741_v52 = vpop.f32.mrb[11].mxu0  ;;  %v805_v53 = vpop.f32.mrb[11].mxu1  ;;  %v355_v38 = vld [vmem:[%s1494_s8 + $0x48] sm:$0xff] }
 0x116   : > { %1074 = vst.msk [vmem:[%s1494_s8 + $0x88] sm:$0xff] %vm313_vm0, %v1042_v39  ;;  %v972_v49 = vmul.f32 %v1655_v2, %v933_v45  ;;  %900 = vst.msk [vmem:[%s1494_s8 + $0xa0] sm:$0xff] %vm313_vm0, %v867_v41  ;;  %v918_v54 = vld [vmem:[%s1494_s8 + $0x18] sm:$0xff]  ;;  %v371_v39 = vld [vmem:[%s1494_s8 + $0xc8] sm:$0xff] }
 0x117   : > { %v934_v55 = vld [vmem:[%s1494_s8 + $0x98] sm:$0xff]  ;;  %v995_v56 = vadd.f32 %v1663_v12, %v956_v48  ;;  %v957_v58 = vmul.f32 %v1655_v2, %v918_v54  ;;  %885 = vst.msk [vmem:[%s1494_s8 + $0x28] sm:$0xff] %vm313_vm0, %v852_v50  ;;  %901 = vst.msk [vmem:[%s1494_s8 + $0xa8] sm:$0xff] %vm313_vm0, %v868_v51 }
 0x118   : > { %v1011_v57 = vadd.f32 %v1663_v12, %v972_v49  ;;  %v973_v59 = vmul.f32 %v1655_v2, %v934_v55 }
 0x119   : > { %v1027_v62 = vmax.f32 %v995_v56, 0.0  ;;  %v996_v0 = vadd.f32 %v1663_v12, %v957_v58 }
 0x11a   : > { %v1043_v63 = vmax.f32 %v1011_v57, 0.0  ;;  %v1012_v1 = vadd.f32 %v1663_v12, %v973_v59  ;;  %v744_v3 = vpop.f32.mrb[12].mxu0  ;;  %v808_v4 = vpop.f32.mrb[12].mxu1 }
 0x11b   : > { %1059 = vst.msk [vmem:[%s1494_s8 + $0x10] sm:$0xff] %vm313_vm0, %v1027_v62  ;;  %v1028_v7 = vmax.f32 %v996_v0, 0.0  ;;  %v853_v9 = vadd.f32 %v744_v3, %v352_v60  ;;  %v869_v10 = vadd.f32 %v808_v4, %v368_v61  ;;  %v746_v11 = vpop.f32.mrb[13].mxu0  ;;  %v810_v13 = vpop.f32.mrb[13].mxu1  ;;  %v356_v62 = vld [vmem:[%s1494_s8 + $0x50] sm:$0xff] }
 0x11c   : > { %1075 = vst.msk [vmem:[%s1494_s8 + $0x90] sm:$0xff] %vm313_vm0, %v1043_v63  ;;  %v1044_v8 = vmax.f32 %v1012_v1, 0.0  ;;  %v919_v14 = vld [vmem:[%s1494_s8 + $0x20] sm:$0xff]  ;;  %v747_v16 = vpop.f32.mrb[14].mxu0  ;;  %v811_v17 = vpop.f32.mrb[14].mxu1  ;;  %v372_v63 = vld [vmem:[%s1494_s8 + $0xd0] sm:$0xff] }
 0x11d   : > { %v935_v15 = vld [vmem:[%s1494_s8 + $0xa0] sm:$0xff]  ;;  %1060 = vst.msk [vmem:[%s1494_s8 + $0x18] sm:$0xff] %vm313_vm0, %v1028_v7  ;;  %v958_v18 = vmul.f32 %v1655_v2, %v919_v14  ;;  %886 = vst.msk [vmem:[%s1494_s8 + $0x30] sm:$0xff] %vm313_vm0, %v853_v9  ;;  %v854_v20 = vadd.f32 %v747_v16, %v353_v5  ;;  %v870_v21 = vadd.f32 %v811_v17, %v369_v6  ;;  %v749_v22 = vpop.f32.mrb[15].mxu0  ;;  %v813_v23 = vpop.f32.mrb[15].mxu1  ;;  %v357_v7 = vld [vmem:[%s1494_s8 + $0x58] sm:$0xff] }
 0x11e   : > { %1076 = vst.msk [vmem:[%s1494_s8 + $0x98] sm:$0xff] %vm313_vm0, %v1044_v8  ;;  %v974_v19 = vmul.f32 %v1655_v2, %v935_v15  ;;  %902 = vst.msk [vmem:[%s1494_s8 + $0xb0] sm:$0xff] %vm313_vm0, %v869_v10  ;;  %v920_v24 = vld [vmem:[%s1494_s8 + $0x28] sm:$0xff]  ;;  %v373_v8 = vld [vmem:[%s1494_s8 + $0xd8] sm:$0xff] }
 0x11f   : > { %v936_v25 = vld [vmem:[%s1494_s8 + $0xa8] sm:$0xff]  ;;  %v997_v26 = vadd.f32 %v1663_v12, %v958_v18  ;;  %v959_v28 = vmul.f32 %v1655_v2, %v920_v24  ;;  %887 = vst.msk [vmem:[%s1494_s8 + $0x38] sm:$0xff] %vm313_vm0, %v854_v20  ;;  %903 = vst.msk [vmem:[%s1494_s8 + $0xb8] sm:$0xff] %vm313_vm0, %v870_v21 }
 0x120   : > { %v1013_v27 = vadd.f32 %v1663_v12, %v974_v19  ;;  %v975_v29 = vmul.f32 %v1655_v2, %v936_v25 }
 0x121   : > { %v1029_v32 = vmax.f32 %v997_v26, 0.0  ;;  %v998_v34 = vadd.f32 %v1663_v12, %v959_v28 }
 0x122   : > { %v1045_v33 = vmax.f32 %v1013_v27, 0.0  ;;  %v1014_v35 = vadd.f32 %v1663_v12, %v975_v29  ;;  %v752_v36 = vpop.f32.mrb[16].mxu0  ;;  %v816_v37 = vpop.f32.mrb[16].mxu1 }
 0x123   : > { %1061 = vst.msk [vmem:[%s1494_s8 + $0x20] sm:$0xff] %vm313_vm0, %v1029_v32  ;;  %v1030_v40 = vmax.f32 %v998_v34, 0.0  ;;  %v855_v42 = vadd.f32 %v752_v36, %v354_v30  ;;  %v871_v43 = vadd.f32 %v816_v37, %v370_v31  ;;  %v754_v44 = vpop.f32.mrb[17].mxu0  ;;  %v818_v45 = vpop.f32.mrb[17].mxu1  ;;  %v358_v32 = vld [vmem:[%s1494_s8 + $0x60] sm:$0xff] }
 0x124   : > { %1077 = vst.msk [vmem:[%s1494_s8 + $0xa0] sm:$0xff] %vm313_vm0, %v1045_v33  ;;  %v1046_v41 = vmax.f32 %v1014_v35, 0.0  ;;  %v921_v46 = vld [vmem:[%s1494_s8 + $0x30] sm:$0xff]  ;;  %v755_v48 = vpop.f32.mrb[18].mxu0  ;;  %v819_v49 = vpop.f32.mrb[18].mxu1  ;;  %v374_v33 = vld [vmem:[%s1494_s8 + $0xe0] sm:$0xff] }
 0x125   : > { %v937_v47 = vld [vmem:[%s1494_s8 + $0xb0] sm:$0xff]  ;;  %1062 = vst.msk [vmem:[%s1494_s8 + $0x28] sm:$0xff] %vm313_vm0, %v1030_v40  ;;  %v960_v50 = vmul.f32 %v1655_v2, %v921_v46  ;;  %888 = vst.msk [vmem:[%s1494_s8 + $0x40] sm:$0xff] %vm313_vm0, %v855_v42  ;;  %v856_v52 = vadd.f32 %v755_v48, %v355_v38  ;;  %v872_v53 = vadd.f32 %v819_v49, %v371_v39  ;;  %v757_v54 = vpop.f32.mrb[19].mxu0  ;;  %v821_v55 = vpop.f32.mrb[19].mxu1  ;;  %v359_v40 = vld [vmem:[%s1494_s8 + $0x68] sm:$0xff] }
 0x126   : > { %1078 = vst.msk [vmem:[%s1494_s8 + $0xa8] sm:$0xff] %vm313_vm0, %v1046_v41  ;;  %v976_v51 = vmul.f32 %v1655_v2, %v937_v47  ;;  %904 = vst.msk [vmem:[%s1494_s8 + $0xc0] sm:$0xff] %vm313_vm0, %v871_v43  ;;  %v922_v56 = vld [vmem:[%s1494_s8 + $0x38] sm:$0xff]  ;;  %v375_v41 = vld [vmem:[%s1494_s8 + $0xe8] sm:$0xff] }
 0x127   : > { %v938_v57 = vld [vmem:[%s1494_s8 + $0xb8] sm:$0xff]  ;;  %v999_v58 = vadd.f32 %v1663_v12, %v960_v50  ;;  %v961_v60 = vmul.f32 %v1655_v2, %v922_v56  ;;  %889 = vst.msk [vmem:[%s1494_s8 + $0x48] sm:$0xff] %vm313_vm0, %v856_v52  ;;  %905 = vst.msk [vmem:[%s1494_s8 + $0xc8] sm:$0xff] %vm313_vm0, %v872_v53 }
 0x128   : > { %v1015_v59 = vadd.f32 %v1663_v12, %v976_v51  ;;  %v977_v61 = vmul.f32 %v1655_v2, %v938_v57 }
 0x129   : > { %v1031_v0 = vmax.f32 %v999_v58, 0.0  ;;  %v1000_v3 = vadd.f32 %v1663_v12, %v961_v60 }
 0x12a   : > { %v1047_v1 = vmax.f32 %v1015_v59, 0.0  ;;  %v1016_v4 = vadd.f32 %v1663_v12, %v977_v61  ;;  %v760_v5 = vpop.f32.mrb[20].mxu0  ;;  %v824_v6 = vpop.f32.mrb[20].mxu1 }
 0x12b   : > { %1063 = vst.msk [vmem:[%s1494_s8 + $0x30] sm:$0xff] %vm313_vm0, %v1031_v0  ;;  %v1032_v9 = vmax.f32 %v1000_v3, 0.0  ;;  %v857_v11 = vadd.f32 %v760_v5, %v356_v62  ;;  %v873_v13 = vadd.f32 %v824_v6, %v372_v63  ;;  %v762_v14 = vpop.f32.mrb[21].mxu0  ;;  %v826_v15 = vpop.f32.mrb[21].mxu1  ;;  %v360_v0 = vld [vmem:[%s1494_s8 + $0x70] sm:$0xff] }
 0x12c   : > { %1079 = vst.msk [vmem:[%s1494_s8 + $0xb0] sm:$0xff] %vm313_vm0, %v1047_v1  ;;  %v1048_v10 = vmax.f32 %v1016_v4, 0.0  ;;  %v923_v16 = vld [vmem:[%s1494_s8 + $0x40] sm:$0xff]  ;;  %v763_v18 = vpop.f32.mrb[22].mxu0  ;;  %v827_v19 = vpop.f32.mrb[22].mxu1  ;;  %v376_v1 = vld [vmem:[%s1494_s8 + $0xf0] sm:$0xff] }
 0x12d   : > { %v939_v17 = vld [vmem:[%s1494_s8 + $0xc0] sm:$0xff]  ;;  %1064 = vst.msk [vmem:[%s1494_s8 + $0x38] sm:$0xff] %vm313_vm0, %v1032_v9  ;;  %v962_v20 = vmul.f32 %v1655_v2, %v923_v16  ;;  %890 = vst.msk [vmem:[%s1494_s8 + $0x50] sm:$0xff] %vm313_vm0, %v857_v11  ;;  %v858_v22 = vadd.f32 %v763_v18, %v357_v7  ;;  %v874_v23 = vadd.f32 %v827_v19, %v373_v8  ;;  %v765_v24 = vpop.f32.mrb[23].mxu0  ;;  %v829_v25 = vpop.f32.mrb[23].mxu1  ;;  %v361_v9 = vld [vmem:[%s1494_s8 + $0x78] sm:$0xff] }
 0x12e   : > { %1080 = vst.msk [vmem:[%s1494_s8 + $0xb8] sm:$0xff] %vm313_vm0, %v1048_v10  ;;  %v978_v21 = vmul.f32 %v1655_v2, %v939_v17  ;;  %906 = vst.msk [vmem:[%s1494_s8 + $0xd0] sm:$0xff] %vm313_vm0, %v873_v13  ;;  %v924_v26 = vld [vmem:[%s1494_s8 + $0x48] sm:$0xff]  ;;  %v377_v10 = vld [vmem:[%s1494_s8 + $0xf8] sm:$0xff] }
 0x12f   : > { %v940_v27 = vld [vmem:[%s1494_s8 + $0xc8] sm:$0xff]  ;;  %v1001_v28 = vadd.f32 %v1663_v12, %v962_v20  ;;  %v963_v30 = vmul.f32 %v1655_v2, %v924_v26  ;;  %891 = vst.msk [vmem:[%s1494_s8 + $0x58] sm:$0xff] %vm313_vm0, %v858_v22  ;;  %907 = vst.msk [vmem:[%s1494_s8 + $0xd8] sm:$0xff] %vm313_vm0, %v874_v23 }
 0x130   : > { %v1017_v29 = vadd.f32 %v1663_v12, %v978_v21  ;;  %v979_v31 = vmul.f32 %v1655_v2, %v940_v27 }
 0x131   : > { %v1033_v34 = vmax.f32 %v1001_v28, 0.0  ;;  %v1002_v36 = vadd.f32 %v1663_v12, %v963_v30 }
 0x132   : > { %v1049_v35 = vmax.f32 %v1017_v29, 0.0  ;;  %v1018_v37 = vadd.f32 %v1663_v12, %v979_v31  ;;  %v768_v38 = vpop.f32.mrb[24].mxu0  ;;  %v832_v39 = vpop.f32.mrb[24].mxu1 }
 0x133   : > { %1065 = vst.msk [vmem:[%s1494_s8 + $0x40] sm:$0xff] %vm313_vm0, %v1033_v34  ;;  %v1034_v42 = vmax.f32 %v1002_v36, 0.0  ;;  %v859_v44 = vadd.f32 %v768_v38, %v358_v32  ;;  %v875_v45 = vadd.f32 %v832_v39, %v374_v33  ;;  %v770_v46 = vpop.f32.mrb[25].mxu0  ;;  %v834_v47 = vpop.f32.mrb[25].mxu1 }
 0x134   : > { %1081 = vst.msk [vmem:[%s1494_s8 + $0xc0] sm:$0xff] %vm313_vm0, %v1049_v35  ;;  %v1050_v43 = vmax.f32 %v1018_v37, 0.0  ;;  %v925_v48 = vld [vmem:[%s1494_s8 + $0x50] sm:$0xff]  ;;  %v771_v50 = vpop.f32.mrb[26].mxu0  ;;  %v835_v51 = vpop.f32.mrb[26].mxu1 }
 0x135   : > { %v941_v49 = vld [vmem:[%s1494_s8 + $0xd0] sm:$0xff]  ;;  %1066 = vst.msk [vmem:[%s1494_s8 + $0x48] sm:$0xff] %vm313_vm0, %v1034_v42  ;;  %v964_v52 = vmul.f32 %v1655_v2, %v925_v48  ;;  %892 = vst.msk [vmem:[%s1494_s8 + $0x60] sm:$0xff] %vm313_vm0, %v859_v44  ;;  %v860_v54 = vadd.f32 %v771_v50, %v359_v40  ;;  %v876_v55 = vadd.f32 %v835_v51, %v375_v41  ;;  %v773_v56 = vpop.f32.mrb[27].mxu0  ;;  %v837_v57 = vpop.f32.mrb[27].mxu1 }
 0x136   : > { %1082 = vst.msk [vmem:[%s1494_s8 + $0xc8] sm:$0xff] %vm313_vm0, %v1050_v43  ;;  %v980_v53 = vmul.f32 %v1655_v2, %v941_v49  ;;  %908 = vst.msk [vmem:[%s1494_s8 + $0xe0] sm:$0xff] %vm313_vm0, %v875_v45  ;;  %v926_v58 = vld [vmem:[%s1494_s8 + $0x58] sm:$0xff] }
 0x137   : > { %v942_v59 = vld [vmem:[%s1494_s8 + $0xd8] sm:$0xff]  ;;  %v1003_v60 = vadd.f32 %v1663_v12, %v964_v52  ;;  %v965_v62 = vmul.f32 %v1655_v2, %v926_v58  ;;  %893 = vst.msk [vmem:[%s1494_s8 + $0x68] sm:$0xff] %vm313_vm0, %v860_v54  ;;  %909 = vst.msk [vmem:[%s1494_s8 + $0xe8] sm:$0xff] %vm313_vm0, %v876_v55 }
 0x138   : > { %v1019_v61 = vadd.f32 %v1663_v12, %v980_v53  ;;  %v981_v63 = vmul.f32 %v1655_v2, %v942_v59 }
 0x139   : > { %v1035_v3 = vmax.f32 %v1003_v60, 0.0  ;;  %v1004_v5 = vadd.f32 %v1663_v12, %v965_v62 }
 0x13a   : > { %v1051_v4 = vmax.f32 %v1019_v61, 0.0  ;;  %v1020_v6 = vadd.f32 %v1663_v12, %v981_v63  ;;  %v776_v7 = vpop.f32.mrb[28].mxu0  ;;  %v840_v8 = vpop.f32.mrb[28].mxu1 }
 0x13b   : > { %1067 = vst.msk [vmem:[%s1494_s8 + $0x50] sm:$0xff] %vm313_vm0, %v1035_v3  ;;  %v1036_v11 = vmax.f32 %v1004_v5, 0.0  ;;  %v861_v14 = vadd.f32 %v776_v7, %v360_v0  ;;  %v877_v15 = vadd.f32 %v840_v8, %v376_v1  ;;  %v778_v16 = vpop.f32.mrb[29].mxu0  ;;  %v842_v17 = vpop.f32.mrb[29].mxu1 }
 0x13c   : > { %1083 = vst.msk [vmem:[%s1494_s8 + $0xd0] sm:$0xff] %vm313_vm0, %v1051_v4  ;;  %v1052_v13 = vmax.f32 %v1020_v6, 0.0  ;;  %v927_v18 = vld [vmem:[%s1494_s8 + $0x60] sm:$0xff]  ;;  %v779_v20 = vpop.f32.mrb[30].mxu0  ;;  %v843_v21 = vpop.f32.mrb[30].mxu1 }
 0x13d   : > { %v943_v19 = vld [vmem:[%s1494_s8 + $0xe0] sm:$0xff]  ;;  %1068 = vst.msk [vmem:[%s1494_s8 + $0x58] sm:$0xff] %vm313_vm0, %v1036_v11  ;;  %v966_v22 = vmul.f32 %v1655_v2, %v927_v18  ;;  %894 = vst.msk [vmem:[%s1494_s8 + $0x70] sm:$0xff] %vm313_vm0, %v861_v14  ;;  %v862_v24 = vadd.f32 %v779_v20, %v361_v9  ;;  %v878_v25 = vadd.f32 %v843_v21, %v377_v10  ;;  %v781_v26 = vpop.f32.mrb[31].mxu0  ;;  %v845_v27 = vpop.f32.mrb[31].mxu1 }
 0x13e   : > { %1084 = vst.msk [vmem:[%s1494_s8 + $0xd8] sm:$0xff] %vm313_vm0, %v1052_v13  ;;  %v982_v23 = vmul.f32 %v1655_v2, %v943_v19  ;;  %910 = vst.msk [vmem:[%s1494_s8 + $0xf0] sm:$0xff] %vm313_vm0, %v877_v15  ;;  %v928_v28 = vld [vmem:[%s1494_s8 + $0x68] sm:$0xff] }
 0x13f   : > { %v944_v29 = vld [vmem:[%s1494_s8 + $0xe8] sm:$0xff]  ;;  %v1005_v30 = vadd.f32 %v1663_v12, %v966_v22  ;;  %v967_v32 = vmul.f32 %v1655_v2, %v928_v28  ;;  %895 = vst.msk [vmem:[%s1494_s8 + $0x78] sm:$0xff] %vm313_vm0, %v862_v24  ;;  %911 = vst.msk [vmem:[%s1494_s8 + $0xf8] sm:$0xff] %vm313_vm0, %v878_v25 }
 0x140   : > { %v1021_v31 = vadd.f32 %v1663_v12, %v982_v23  ;;  %v983_v33 = vmul.f32 %v1655_v2, %v944_v29 }
 0x141   : > { %v1037_v34 = vmax.f32 %v1005_v30, 0.0  ;;  %v1006_v36 = vadd.f32 %v1663_v12, %v967_v32 }
 0x142   : > { %v1053_v35 = vmax.f32 %v1021_v31, 0.0  ;;  %v1022_v37 = vadd.f32 %v1663_v12, %v983_v33 }
 0x143   : > { %1069 = vst.msk [vmem:[%s1494_s8 + $0x60] sm:$0xff] %vm313_vm0, %v1037_v34  ;;  %v1038_v38 = vmax.f32 %v1006_v36, 0.0 }
 0x144   : > { %1085 = vst.msk [vmem:[%s1494_s8 + $0xe0] sm:$0xff] %vm313_vm0, %v1053_v35  ;;  %v1054_v39 = vmax.f32 %v1022_v37, 0.0  ;;  %v929_v40 = vld [vmem:[%s1494_s8 + $0x70] sm:$0xff] }
 0x145   : > { %v945_v41 = vld [vmem:[%s1494_s8 + $0xf0] sm:$0xff]  ;;  %1070 = vst.msk [vmem:[%s1494_s8 + $0x68] sm:$0xff] %vm313_vm0, %v1038_v38  ;;  %v968_v42 = vmul.f32 %v1655_v2, %v929_v40 }
 0x146   : > { %1086 = vst.msk [vmem:[%s1494_s8 + $0xe8] sm:$0xff] %vm313_vm0, %v1054_v39  ;;  %v984_v43 = vmul.f32 %v1655_v2, %v945_v41  ;;  %v930_v44 = vld [vmem:[%s1494_s8 + $0x78] sm:$0xff] }
 0x147   : > { %v946_v45 = vld [vmem:[%s1494_s8 + $0xf8] sm:$0xff]  ;;  %v1007_v46 = vadd.f32 %v1663_v12, %v968_v42  ;;  %v969_v48 = vmul.f32 %v1655_v2, %v930_v44 }
 0x148   : > { %v1023_v47 = vadd.f32 %v1663_v12, %v984_v43  ;;  %v985_v49 = vmul.f32 %v1655_v2, %v946_v45 }
 0x149   : > { %v1039_v50 = vmax.f32 %v1007_v46, 0.0  ;;  %v1008_v52 = vadd.f32 %v1663_v12, %v969_v48 }
 0x14a   : > { %v1055_v51 = vmax.f32 %v1023_v47, 0.0  ;;  %v1024_v53 = vadd.f32 %v1663_v12, %v985_v49 }
 0x14b   : > { %1071 = vst.msk [vmem:[%s1494_s8 + $0x70] sm:$0xff] %vm313_vm0, %v1039_v50  ;;  %v1040_v54 = vmax.f32 %v1008_v52, 0.0 }
 0x14c   : > { %1087 = vst.msk [vmem:[%s1494_s8 + $0xf0] sm:$0xff] %vm313_vm0, %v1055_v51  ;;  %v1056_v55 = vmax.f32 %v1024_v53, 0.0 }
 0x14d   : > { %1072 = vst.msk [vmem:[%s1494_s8 + $0x78] sm:$0xff] %vm313_vm0, %v1040_v54 }
 0x14e   : > { %1088 = vst.msk [vmem:[%s1494_s8 + $0xf8] sm:$0xff] %vm313_vm0, %v1056_v55 }
 0x14f PF: > { %s14_s17 = sadd.s32 1, %s1418_s17   ;;  %s1918_s15 = smov %s1414_s16 }
 0x150   : > { %p11_p5 = scmp.ge.s32.totalorder %s14_s17, 10   ;;  %s1919_s16 = smov %s1921_s18 }
 0x152   :  { %13 = sbr.rel (!%p11_p5) target bundleno = 2 (0x2), region = 83 }

</bundles_post_ra>
